<compile_context>
chip_gen: v7x
topology: tpu7x:2x2x1
jax: 0.10.0
libtpu: 0.0.40
codegen_flags: <defaults>
</compile_context>

<pallas_src>
import jax
import jax.numpy as jnp
from jax.experimental import pallas as pl
from jax.experimental.pallas import tpu as pltpu


def _pick_hw_tile(C, HW, itemsize):
    """Pick a lane-dense HW tile: whole HW if small, else a multiple of 128
    sized so one block is ~4 MiB (double-buffered -> well inside the default
    scoped VMEM on every generation, including v7x's 64 MiB physical)."""
    if C * HW * itemsize <= 2 * 1024 * 1024:
        return int(HW)
    target_bytes = 4 * 1024 * 1024
    t = (target_bytes // (C * itemsize)) // 128 * 128
    t = max(t, 512)
    t = min(t, pl.cdiv(HW, 128) * 128)
    return int(t)


def _make_kernel(HW, hw_tile, needs_mask):
    inv_hw = 1.0 / float(HW)

    def kernel(x_ref, w1_ref, w2_ref, out_ref, sum_acc, max_acc):
        # x_ref   : (C, hw_tile)  -- one batch element, one spatial tile
        # w1_ref  : (Ch, C)       -- fc1 weight
        # w2_ref  : (C, Ch)       -- fc2 weight
        # out_ref : (C, 1)
        # sum_acc / max_acc : (C, 1) f32 scratch accumulators
        k = pl.program_id(1)

        @pl.when(k == 0)
        def _():
            sum_acc[...] = jnp.zeros_like(sum_acc)
            max_acc[...] = jnp.full_like(max_acc, -jnp.inf)

        x = x_ref[...].astype(jnp.float32)                       # (C, hw_tile)
        if needs_mask:
            lane = jax.lax.broadcasted_iota(jnp.int32, x.shape, 1)
            valid = lane < (HW - k * hw_tile)
            x_sum = jnp.where(valid, x, 0.0)
            x_max = jnp.where(valid, x, -jnp.inf)
        else:
            x_sum = x
            x_max = x

        sum_acc[...] += jnp.sum(x_sum, axis=-1, keepdims=True)   # (C, 1)
        max_acc[...] = jnp.maximum(
            max_acc[...], jnp.max(x_max, axis=-1, keepdims=True))

        @pl.when(k == pl.num_programs(1) - 1)
        def _():
            avg = sum_acc[...] * inv_hw                          # (C, 1)
            pooled = jnp.concatenate([avg, max_acc[...]], axis=1)  # (C, 2)
            w1 = w1_ref[...].astype(jnp.float32)                 # (Ch, C)
            w2 = w2_ref[...].astype(jnp.float32)                 # (C, Ch)
            # Stacked avg/max MLP: one pass through fc1/relu/fc2 for both.
            h = jnp.maximum(
                jnp.dot(w1, pooled, preferred_element_type=jnp.float32), 0.0)  # (Ch, 2)
            y = jnp.dot(w2, h, preferred_element_type=jnp.float32)             # (C, 2)
            att = jax.nn.sigmoid(y[:, 0:1] + y[:, 1:2])          # (C, 1)
            out_ref[...] = att.astype(out_ref.dtype)

    return kernel


def channel_attention(x_nchw, w1, w2, *, hw_tile=None):
    """x_nchw: (B, C, H, W); w1: (Ch, C, 1, 1); w2: (C, Ch, 1, 1). Returns (B, C, 1, 1)."""
    B, C, H, W = x_nchw.shape
    HW = H * W
    Ch = w1.shape[0]

    # Free reshapes only -- no data movement in the wrapper.
    x = x_nchw.reshape(B, C, HW)
    w1m = w1.reshape(Ch, C)
    w2m = w2.reshape(C, Ch)

    if hw_tile is None:
        hw_tile = _pick_hw_tile(C, HW, x.dtype.itemsize)
    n_hw = pl.cdiv(HW, hw_tile)
    needs_mask = (HW % hw_tile) != 0

    kernel = _make_kernel(HW, hw_tile, needs_mask)

    out = pl.pallas_call(
        kernel,
        out_shape=jax.ShapeDtypeStruct((B, C, 1), x.dtype),
        grid_spec=pltpu.PrefetchScalarGridSpec(
            num_scalar_prefetch=0,
            grid=(B, n_hw),
            in_specs=[
                pl.BlockSpec((pl.Squeezed(), C, hw_tile), lambda b, k: (b, 0, k)),
                pl.BlockSpec((Ch, C), lambda b, k: (0, 0)),
                pl.BlockSpec((C, Ch), lambda b, k: (0, 0)),
            ],
            out_specs=pl.BlockSpec((pl.Squeezed(), C, 1), lambda b, k: (b, 0, 0)),
            scratch_shapes=[
                pltpu.VMEM((C, 1), jnp.float32),   # running sum
                pltpu.VMEM((C, 1), jnp.float32),   # running max
            ],
        ),
        compiler_params=pltpu.CompilerParams(
            dimension_semantics=("parallel", "arbitrary")),
    )(x, w1m, w2m)

    return out.reshape(B, C, 1, 1)


def _reference(x_nchw, w1, w2):
    """Pure-JAX reference reproducing the PyTorch forward."""
    B, C, H, W = x_nchw.shape
    Ch = w1.shape[0]
    w1m = w1.reshape(Ch, C).astype(jnp.float32)
    w2m = w2.reshape(C, Ch).astype(jnp.float32)
    xf = x_nchw.astype(jnp.float32)
    avg = jnp.mean(xf, axis=(2, 3))            # (B, C)
    mx = jnp.max(xf, axis=(2, 3))              # (B, C)

    def mlp(p):
        return jnp.maximum(p @ w1m.T, 0.0) @ w2m.T

    out = jax.nn.sigmoid(mlp(avg) + mlp(mx))
    return out.reshape(B, C, 1, 1).astype(x_nchw.dtype)


if __name__ == "__main__":
    key = jax.random.PRNGKey(0)
    ratio = 16

    # Case 1: canonical small shape (single HW tile, no mask path).
    B, C, H, W = 2, 32, 16, 16
    Ch = max(C // ratio, 1)
    kx, k1, k2, key = jax.random.split(key, 4)
    x = jax.random.normal(kx, (B, C, H, W), dtype=jnp.float32)
    w1 = jax.random.normal(k1, (Ch, C, 1, 1), dtype=jnp.float32) * (2.0 / C) ** 0.5
    w2 = jax.random.normal(k2, (C, Ch, 1, 1), dtype=jnp.float32) * (2.0 / Ch) ** 0.5

    out = jax.block_until_ready(channel_attention(x, w1, w2))
    ref = _reference(x, w1, w2)
    assert out.shape == (B, C, 1, 1)
    assert jnp.allclose(out, ref, atol=1e-5, rtol=1e-5), "case1 mismatch vs reference"

    # Case 2: non-multiple-of-128 spatial size with a forced small HW tile to
    # exercise the streamed, masked-tail reduction path (grid=(B, 2)).
    B2, C2, H2, W2 = 2, 32, 13, 11
    Ch2 = max(C2 // ratio, 1)
    kx2, k12, k22, key = jax.random.split(key, 4)
    x2 = jax.random.normal(kx2, (B2, C2, H2, W2), dtype=jnp.float32)
    w12 = jax.random.normal(k12, (Ch2, C2, 1, 1), dtype=jnp.float32) * (2.0 / C2) ** 0.5
    w22 = jax.random.normal(k22, (C2, Ch2, 1, 1), dtype=jnp.float32) * (2.0 / Ch2) ** 0.5

    out2 = jax.block_until_ready(channel_attention(x2, w12, w22, hw_tile=128))
    ref2 = _reference(x2, w12, w22)
    assert jnp.allclose(out2, ref2, atol=1e-5, rtol=1e-5), "case2 mismatch vs reference"

    print("KERNEL_OK")
</pallas_src>

<mosaic_0001>
module attributes {stable_mosaic.version = 11 : i64} {
  func.func @kernel(%arg0: i32, %arg1: i32, %arg2: memref<1x32x256xf32, #tpu.memory_space<vmem>>, %arg3: memref<2x32xf32, #tpu.memory_space<vmem>>, %arg4: memref<32x2xf32, #tpu.memory_space<vmem>>, %arg5: memref<1x32x1xf32, #tpu.memory_space<vmem>>, %arg6: memref<32x1xf32, #tpu.memory_space<vmem>>, %arg7: memref<32x1xf32, #tpu.memory_space<vmem>>) attributes {dimension_semantics = [#tpu.dimension_semantics<parallel>, #tpu.dimension_semantics<arbitrary>], iteration_bounds = array<i64: 2, 1>, scalar_prefetch = 0 : i64, scratch_operands = 2 : i64, tpu.core_type = #tpu.core_type<tc>, window_params = [{transform_indices = @transform_0, window_bounds = array<i64: 1, 32, 256>}, {pipeline_mode = #tpu.pipeline_mode<synchronous>, transform_indices = @transform_1, window_bounds = array<i64: 2, 32>}, {pipeline_mode = #tpu.pipeline_mode<synchronous>, transform_indices = @transform_2, window_bounds = array<i64: 32, 2>}, {transform_indices = @transform_3, window_bounds = array<i64: 1, 32, 1>}]} {
    %c0_i32 = arith.constant 0 : i32
    %0 = arith.cmpi eq, %arg1, %c0_i32 : i32
    %1 = arith.extui %0 : i1 to i32
    %c0_i32_0 = arith.constant 0 : i32
    %2 = arith.cmpi ne, %1, %c0_i32_0 : i32
    scf.if %2 {
      %cst_14 = arith.constant 0.000000e+00 : f32
      %18 = vector.broadcast %cst_14 : f32 to vector<32x1xf32>
      %c0_15 = arith.constant 0 : index
      %c0_16 = arith.constant 0 : index
      %19 = vector.load %arg6[%c0_15, %c0_16] : memref<32x1xf32, #tpu.memory_space<vmem>>, vector<32x1xf32>
      tpu.vector_store %arg6[%c0_15, %c0_16], %18 {strides = array<i32>} : memref<32x1xf32, #tpu.memory_space<vmem>>, vector<32x1xf32>,
      %cst_17 = arith.constant 0xFF800000 : f32
      %20 = vector.broadcast %cst_17 : f32 to vector<32x1xf32>
      %c0_18 = arith.constant 0 : index
      %c0_19 = arith.constant 0 : index
      %21 = vector.load %arg7[%c0_18, %c0_19] : memref<32x1xf32, #tpu.memory_space<vmem>>, vector<32x1xf32>
      tpu.vector_store %arg7[%c0_18, %c0_19], %20 {strides = array<i32>} : memref<32x1xf32, #tpu.memory_space<vmem>>, vector<32x1xf32>,
    } else {
    }
    %c0 = arith.constant 0 : index
    %c0_1 = arith.constant 0 : index
    %c0_2 = arith.constant 0 : index
    %3 = vector.load %arg2[%c0, %c0_1, %c0_2] : memref<1x32x256xf32, #tpu.memory_space<vmem>>, vector<1x32x256xf32>
    %4 = vector.shape_cast %3 : vector<1x32x256xf32> to vector<32x256xf32>
    %c0_3 = arith.constant 0 : index
    %c0_4 = arith.constant 0 : index
    %5 = vector.load %arg6[%c0_3, %c0_4] : memref<32x1xf32, #tpu.memory_space<vmem>>, vector<32x1xf32>
    %cst = arith.constant dense<0.000000e+00> : vector<32xf32>
    %6 = vector.multi_reduction <add>, %4, %cst [1] : vector<32x256xf32> to vector<32xf32>
    %7 = vector.shape_cast %6 : vector<32xf32> to vector<32x1xf32>
    %8 = arith.addf %5, %7 : vector<32x1xf32>
    %c0_5 = arith.constant 0 : index
    %c0_6 = arith.constant 0 : index
    %9 = vector.load %arg6[%c0_5, %c0_6] : memref<32x1xf32, #tpu.memory_space<vmem>>, vector<32x1xf32>
    tpu.vector_store %arg6[%c0_5, %c0_6], %8 {strides = array<i32>} : memref<32x1xf32, #tpu.memory_space<vmem>>, vector<32x1xf32>,
    %c0_7 = arith.constant 0 : index
    %c0_8 = arith.constant 0 : index
    %10 = vector.load %arg7[%c0_7, %c0_8] : memref<32x1xf32, #tpu.memory_space<vmem>>, vector<32x1xf32>
    %cst_9 = arith.constant dense<0xFF800000> : vector<32xf32>
    %11 = vector.multi_reduction <maximumf>, %4, %cst_9 [1] : vector<32x256xf32> to vector<32xf32>
    %12 = vector.shape_cast %11 : vector<32xf32> to vector<32x1xf32>
    %13 = arith.maximumf %10, %12 : vector<32x1xf32>
    %c0_10 = arith.constant 0 : index
    %c0_11 = arith.constant 0 : index
    %14 = vector.load %arg7[%c0_10, %c0_11] : memref<32x1xf32, #tpu.memory_space<vmem>>, vector<32x1xf32>
    tpu.vector_store %arg7[%c0_10, %c0_11], %13 {strides = array<i32>} : memref<32x1xf32, #tpu.memory_space<vmem>>, vector<32x1xf32>,
    %c0_i32_12 = arith.constant 0 : i32
    %15 = arith.cmpi eq, %arg1, %c0_i32_12 : i32
    %16 = arith.extui %15 : i1 to i32
    %c0_i32_13 = arith.constant 0 : i32
    %17 = arith.cmpi ne, %16, %c0_i32_13 : i32
    scf.if %17 {
      %c0_14 = arith.constant 0 : index
      %c0_15 = arith.constant 0 : index
      %18 = vector.load %arg6[%c0_14, %c0_15] : memref<32x1xf32, #tpu.memory_space<vmem>>, vector<32x1xf32>
      %cst_16 = arith.constant 3.906250e-03 : f32
      %19 = vector.broadcast %cst_16 : f32 to vector<32x1xf32>
      %20 = arith.mulf %18, %19 : vector<32x1xf32>
      %c0_17 = arith.constant 0 : index
      %c0_18 = arith.constant 0 : index
      %21 = vector.load %arg7[%c0_17, %c0_18] : memref<32x1xf32, #tpu.memory_space<vmem>>, vector<32x1xf32>
      %22 = tpu.concatenate %20, %21 in 1 : vector<32x1xf32>, vector<32x1xf32> -> vector<32x2xf32>
      %c0_19 = arith.constant 0 : index
      %c0_20 = arith.constant 0 : index
      %23 = vector.load %arg3[%c0_19, %c0_20] : memref<2x32xf32, #tpu.memory_space<vmem>>, vector<2x32xf32>
      %c0_21 = arith.constant 0 : index
      %c0_22 = arith.constant 0 : index
      %24 = vector.load %arg4[%c0_21, %c0_22] : memref<32x2xf32, #tpu.memory_space<vmem>>, vector<32x2xf32>
      %cst_23 = arith.constant dense<0.000000e+00> : vector<2x2xf32>
      %25 = tpu.matmul %23, %22, %cst_23 {dimension_numbers = #tpu.dot_dimension_numbers<[1], [0], [0], [1], [0, 0, 1, 1], [], []>} : vector<2x32xf32>, vector<32x2xf32>, vector<2x2xf32> -> vector<2x2xf32>
      %cst_24 = arith.constant 0.000000e+00 : f32
      %26 = vector.broadcast %cst_24 : f32 to vector<2x2xf32>
      %27 = arith.maximumf %25, %26 : vector<2x2xf32>
      %cst_25 = arith.constant dense<0.000000e+00> : vector<32x2xf32>
      %28 = tpu.matmul %24, %27, %cst_25 {dimension_numbers = #tpu.dot_dimension_numbers<[1], [0], [0], [1], [0, 0, 1, 1], [], []>} : vector<32x2xf32>, vector<2x2xf32>, vector<32x2xf32> -> vector<32x2xf32>
      %29 = vector.extract_strided_slice %28 {offsets = [0, 0], sizes = [32, 1], strides = [1, 1]} : vector<32x2xf32> to vector<32x1xf32>
      %30 = vector.extract_strided_slice %28 {offsets = [0, 1], sizes = [32, 1], strides = [1, 1]} : vector<32x2xf32> to vector<32x1xf32>
      %31 = arith.addf %29, %30 : vector<32x1xf32>
      %32 = arith.negf %31 : vector<32x1xf32>
      %33 = math.exp %32 : vector<32x1xf32>
      %cst_26 = arith.constant 1.000000e+00 : f32
      %34 = vector.broadcast %cst_26 : f32 to vector<32x1xf32>
      %35 = arith.addf %34, %33 : vector<32x1xf32>
      %36 = arith.divf %34, %35 : vector<32x1xf32>
      %c0_27 = arith.constant 0 : index
      %c0_28 = arith.constant 0 : index
      %c0_29 = arith.constant 0 : index
      %37 = vector.load %arg5[%c0_27, %c0_28, %c0_29] : memref<1x32x1xf32, #tpu.memory_space<vmem>>, vector<1x32x1xf32>
      %38 = vector.shape_cast %37 : vector<1x32x1xf32> to vector<32x1xf32>
      %39 = vector.shape_cast %36 : vector<32x1xf32> to vector<1x32x1xf32>
      tpu.vector_store %arg5[%c0_27, %c0_28, %c0_29], %39 {strides = array<i32>} : memref<1x32x1xf32, #tpu.memory_space<vmem>>, vector<1x32x1xf32>,
    } else {
    }
    return
  }
  func.func @transform_0(%arg0: i32, %arg1: i32) -> (i32, i32, i32) {
    %c0_i32 = arith.constant 0 : i32
    %c0_i32_0 = arith.constant 0 : i32
    return %arg0, %c0_i32, %arg1 : i32, i32, i32
  }
  func.func @transform_1(%arg0: i32, %arg1: i32) -> (i32, i32) {
    %c0_i32 = arith.constant 0 : i32
    %c0_i32_0 = arith.constant 0 : i32
    %c0_i32_1 = arith.constant 0 : i32
    return %c0_i32, %c0_i32_0 : i32, i32
  }
  func.func @transform_2(%arg0: i32, %arg1: i32) -> (i32, i32) {
    %c0_i32 = arith.constant 0 : i32
    %c0_i32_0 = arith.constant 0 : i32
    %c0_i32_1 = arith.constant 0 : i32
    return %c0_i32, %c0_i32_0 : i32, i32
  }
  func.func @transform_3(%arg0: i32, %arg1: i32) -> (i32, i32, i32) {
    %c0_i32 = arith.constant 0 : i32
    %c0_i32_0 = arith.constant 0 : i32
    %c0_i32_1 = arith.constant 0 : i32
    return %arg0, %c0_i32, %c0_i32_0 : i32, i32, i32
  }
}

</mosaic_0001>

<bundles_post_ra>
// kernel: tpu_custom_call.1
= control target key start
LH: loop header
LB: loop body
LE: loop exit
PB: predicated region body
PF: predicated region fallthrough
CT: control target
= control target key end

     0   :  { %8 = vsyncpa [#allocation5], 0  ;;  %s1044_s0 = inlined_call_operand.hbm [shape: f32[2,32,256], index: 0, kind: input, shape index: {}]   ;;  %s1045_s1 = inlined_call_operand.vmem [shape: f32[2,32], index: 1, kind: input, shape index: {}]   ;;  %s1046_s2 = inlined_call_operand.vmem [shape: f32[32,2], index: 2, kind: input, shape index: {}]   ;;  %s1047_s3 = inlined_call_operand.vmem [shape: f32[2,32,1], index: 3, kind: output, shape index: {}]  }
   0x1   :  { %10 = vsyncpa [#allocation5 + $0x1], 0  ;;  %s881_s12 = smov 0   ;;  %s883_s13 = smov 0  }
   0x2   :  { %s885_s14 = smov 0   ;;  %s887_s15 = smov 0  }
   0x3   :  { %s889_s16 = smov 0   ;;  %s891_s17 = smov 0  }
   0x4 LB: > { %s621_s18 = sadd.s32 4294967295, %s850_s17   ;;  %s28_s19 = sadd.s32 1, %s846_s16  ;;  %s850_s17 = sphi %s891_s17, %s16_s17   ;;  %s846_s16 = sphi %s889_s16, %s1055_s16   ;;  %s842_s15 = sphi %s887_s15, %s1054_s15   ;;  %s838_s14 = sphi %s885_s14, %s1053_s14   ;;  %s834_s13 = sphi %s883_s13, %s1052_s13   ;;  %s830_s12 = sphi %s881_s12, %s1051_s12  }
   0x5   : > { %p30_p0 = scmp.ge.s32.totalorder %s28_s19, 2  ;;  %s37_s20 = sadd.s32 1, %s838_s14 }
   0x6   : > { %p44_p1 = scmp.ne.s32.totalorder %s838_s14, %s834_s13  ;;  %p45_p2 = scmp.eq.s32.totalorder %s850_s17, 0 }
   0x7   : > { %s1057_s19 = smov (%p30_p0, %s28_s19), 0  ;;  %p50_p4 = scmp.ne.s32.totalorder %s834_s13, %s830_s12 }
   0x8   : > { %p917_p3 = por %p45_p2, %p44_p1  ;;  %s32_s22 = ssub.s32 %s846_s16, %s1057_s19 }
   0x9   : > { %p51_p5 = scmp.eq.s32.totalorder %s621_s18, 0  ;;  %p35_p6 = scmp.eq.s32.totalorder %s32_s22, 0 }
   0xa   : > { %p687_p8 = scmp.lt.s32.totalorder %s850_s17, 2  ;;  %s148_s25 = sand.u32 1, %s838_s14  }
   0xb   : > { %p924_p7 = por %p51_p5, %p50_p4  ;;  %s644_s26 = sshll.u32 %s846_s16, 10 }
   0xc   : > { %s930_s24 = scalar_select %p35_p6, %s838_s14, %s37_s20  }
   0xd   : > { %s625_s27 = sshll.u32 %s148_s25, 6  ;;  %s937_s30 = scalar_lea.hbm %s1044_s0, %s644_s26 }
   0xe   : > { %s152_s4 = scalar_lea.vmem [#allocation4], %s625_s27  ;;  %p941_p9 = pnand %p687_p8, %p917_p3 }
   0xf   : > { %s161_s5 = sshll.u32 %s152_s4, 4  ;;  %s947_s7 = scalar_lea.sflag [#allocation5], %s148_s25  ;;  %s945_s5 = int_to_ptr.vmem [resolvable:$true] %s161_s5 }
  0x10   : > { %s770_s8 = scalar_lea.hbm %s937_s30, 1024  ;;  %p772_p11 = pneg %p941_p9 }
  0x11   : > { %p771_p10 = scmp.ne.s32.totalorder %s937_s30, %s770_s8  ;;  %s775_s11 = scalar_lea.hbm %s1044_s0, 2048 }
  0x12   : > { %p776_p0 = scmp.lt.u32.totalorder %s937_s30, %s1044_s0  ;;  %p777_p1 = scmp.lt.u32.totalorder %s775_s11, %s770_s8 }
  0x13   : > { %p773_p12 = pnand %p772_p11, %p771_p10  ;;  %p779_p3 = scmp.lt.u32.totalorder %s770_s8, %s937_s30 }
  0x14   : > { %p778_p2 = por %p777_p1, %p776_p0 }
  0x15   : > { %p774_p13 = pneg %p773_p12 }
  0x16   : > { %p780_p4 = por %p779_p3, %p778_p2 }
  0x18   : > { %p781_p5 = pnand %p780_p4, %p774_p13 }
  0x1a   : > { %784 = shalt.err (!%p781_p5)
}
  0x1b   : > { %s785_s20 = scalar_lea.vmem %s945_s5, 1024  ;;  %s852_s21 = smov [#allocation4]  }
  0x1c   : > { %p786_p6 = scmp.ne.s32.totalorder %s945_s5, %s785_s20  ;;  %s790_s22 = sshll.u32 %s852_s21, 4  ;;  %s791_s22 = int_to_ptr.vmem [resolvable:$false] %s790_s22 }
  0x1d   : > { %s792_s25 = scalar_lea.vmem %s791_s22, 2048  ;;  %p793_p12 = scmp.lt.s32.totalorder %s945_s5, %s791_s22 }
  0x1e   : > { %p788_p8 = pnand %p786_p6, %p772_p11  ;;  %p794_p0 = scmp.lt.s32.totalorder %s792_s25, %s785_s20 }
  0x20   : > { %p789_p10 = pneg %p788_p8  ;;  %p795_p1 = por %p794_p0, %p793_p12 }
  0x22   : > { %p796_p2 = pnand %p795_p1, %p789_p10 }
  0x24   : > { %799 = shalt.err (!%p796_p2)
}
  0x25   : > { %s853_s26 = smov 256   ;;  %s854_s27 = smov 16  }
  0x26   : > { %686 = dma.hbm_to_vmem [thread:$0]  (!%p941_p9), %s937_s30, 1024, %s945_s5, %s947_s7, %s853_s26, %s853_s26, %s854_s27  }
  0x27   : > { %p628_p11 = scmp.ge.s32.totalorder %s850_s17, 1  ;;  %p169_p13 = scmp.lt.s32.totalorder %s850_s17, 3 }
  0x29   : > { %p170_p3 = pnand %p628_p11, %p169_p13 }
  0x2a   : > { %s175_s28 = sand.u32 (!%p170_p3), 1, %s834_s13  }
  0x2b   : > { %173 = sbr.rel (%p170_p3) target bundleno = 920 (0x398), region = 32  ;;  %s629_s29 = sshll.u32 (!%p170_p3), %s175_s28, 6 }
  0x2c   : > { %s176_s4 = scalar_lea.sflag (!%p170_p3), [#allocation5], %s175_s28  ;;  %s179_s8 = scalar_lea.vmem (!%p170_p3), [#allocation4], %s629_s29 }
  0x32   : > { %825 = dma.done.wait (%p924_p7), %s176_s4, 1024  }
  0x33   : > { %827 = vsyncadd (%p924_p7), %s176_s4, 4294966272  ;;  %vm212_vm0 = vcmask 7168   ;;  %v855_v0 = vmov -inf   ;;  %v225_v1 = vld [vmem:[%s179_s8 + $0x20] sm:$0xff]  ;;  %v226_v2 = vld [vmem:[%s179_s8 + $0x28] sm:$0xff]  ;;  %v856_v17 = vmov 0.0  }
  0x34   : > { %219 = vst.msk [vmem:[#allocation3 + $0x10] sm:$0xff] %vm212_vm0, %v855_v0  ;;  %217 = vst.msk [vmem:[#allocation3] sm:$0xff] %vm212_vm0, %v855_v0  ;;  %v221_v3 = vld [vmem:[%s179_s8] sm:$0xff]  ;;  %v264_v4 = vmax.f32 %v225_v1, %v226_v2  ;;  %v222_v5 = vld [vmem:[%s179_s8 + $0x8] sm:$0xff]  ;;  %v239_v16 = vadd.f32 %v226_v2, %v225_v1  ;;  %v857_v31 = vmov 0.0|0.0   ;;  %vm858_vm1 = vmmov 0  }
  0x35   : > { %218 = vst.msk [vmem:[#allocation3 + $0x8] sm:$0xff] %vm212_vm0, %v855_v0  ;;  %220 = vst.msk [vmem:[#allocation3 + $0x18] sm:$0xff] %vm212_vm0, %v855_v0  ;;  %v227_v6 = vld [vmem:[%s179_s8 + $0x30] sm:$0xff]  ;;  %v228_v7 = vld [vmem:[%s179_s8 + $0x38] sm:$0xff]  ;;  %v258_v8 = vmax.f32 %v221_v3, %v222_v5  ;;  %v233_v14 = vadd.f32 %v222_v5, %v221_v3  ;;  %675 = vmatprep.subr.bf16.mxu0 %v857_v31  ;;  %664 = vmatprep.mubr.msk.f32.mxu0 %vm858_vm1, %v856_v17  ;;  %s859_s23 = smov 1   ;;  %vm318_vm2 = vcmask 261120  }
  0x36   : > { %v223_v9 = vld [vmem:[%s179_s8 + $0x10] sm:$0xff]  ;;  %v224_v10 = vld [vmem:[%s179_s8 + $0x18] sm:$0xff]  ;;  %265 = vmax.xlane.f32.xlu1 %v264_v4  ;;  %v267_v11 = vmax.f32 %v227_v6, %v228_v7  ;;  %v242_v15 = vadd.f32 %v228_v7, %v227_v6  ;;  %214 = vst.msk [vmem:[#allocation2 + $0x8] sm:$0xff] %vm212_vm0, %v856_v17  ;;  %213 = vst.msk [vmem:[#allocation2] sm:$0xff] %vm212_vm0, %v856_v17  ;;  %vm393_vm3 = vcmask 15360   ;;  %vm406_vm4 = vcmask 1041408  }
  0x37   : > { %259 = vmax.xlane.f32.xlu0 %v258_v8  ;;  %v261_v12 = vmax.f32 %v223_v9, %v224_v10  ;;  %v236_v13 = vadd.f32 %v224_v10, %v223_v9  ;;  %215 = vst.msk [vmem:[#allocation2 + $0x10] sm:$0xff] %vm212_vm0, %v856_v17  ;;  %216 = vst.msk [vmem:[#allocation2 + $0x18] sm:$0xff] %vm212_vm0, %v856_v17  ;;  %v313_v5 = vld [vmem:[%s1045_s1] sm:$0x3]  ;;  %v315_v10 = vld [vmem:[%s1046_s2 + $0x8] sm:$0xff]  ;;  %s860_s21 = smov 127  }
  0x38   : > { %v314_v6 = vld [vmem:[%s1046_s2] sm:$0xff]  ;;  %p203_p7 = scmp.lt.s32.totalorder %s842_s15, 1 }
  0x39   : > { %669 = vmatprep.mubr.msk.f32.mxu1 %vm393_vm3, %v314_v6 }
  0x3a   : > { %268 = vmax.xlane.f32.xlu1 %v267_v11  ;;  %v316_v11 = vld [vmem:[%s1046_s2 + $0x10] sm:$0xff]  ;;  %s1059_s15 = smov (!%p203_p7, %s842_s15), 1 }
  0x3b   : > { %262 = vmax.xlane.f32.xlu0 %v261_v12  ;;  %v256_v18 = vld [vmem:[#allocation3 + $0x10] sm:$0xff]  ;;  %v254_v19 = vld [vmem:[#allocation3] sm:$0xff]  ;;  %v317_v12 = vld [vmem:[%s1046_s2 + $0x18] sm:$0xff]  ;;  %s645_s22 = sshll.u32 %s1059_s15, 5 }
  0x3c   : > { %v257_v24 = vld [vmem:[#allocation3 + $0x18] sm:$0xff]  ;;  %v255_v25 = vld [vmem:[#allocation3 + $0x8] sm:$0xff]  ;;  %s207_s27 = scalar_lea.vmem %s1047_s3, %s645_s22 }
  0x3d   : > { %v230_v30 = vld [vmem:[#allocation2 + $0x8] sm:$0xff]  ;;  %v229_v32 = vld [vmem:[#allocation2] sm:$0xff] }
  0x3e   : > { %237 = vadd.xlane.f32.xlu1 %v236_v13  ;;  %v232_v37 = vld [vmem:[#allocation2 + $0x18] sm:$0xff]  ;;  %v231_v38 = vld [vmem:[#allocation2 + $0x10] sm:$0xff] }
  0x3f   : > { %234 = vadd.xlane.f32.xlu0 %v233_v14 }
  0x42   : > { %243 = vadd.xlane.f32.xlu1 %v242_v15 }
  0x43   : > { %240 = vadd.xlane.f32.xlu0 %v239_v16 }
  0xc3   : > { %v266_v20 = vpop.xlane.xlu1 %265 }
  0xc4   : > { %v272_v21 = vmax.f32 %v256_v18, %v266_v20  ;;  %v260_v22 = vpop.xlane.xlu0 %259 }
  0xc5   : > { %v270_v23 = vmax.f32 %v254_v19, %v260_v22 }
  0xc6   : > { %276 = vst.msk [vmem:[#allocation3 + $0x10] sm:$0xff] %vm212_vm0, %v272_v21 }
  0xc7   : > { %274 = vst.msk [vmem:[#allocation3] sm:$0xff] %vm212_vm0, %v270_v23  ;;  %v269_v26 = vpop.xlane.xlu1 %268 }
  0xc8   : > { %v273_v27 = vmax.f32 %v257_v24, %v269_v26  ;;  %v263_v28 = vpop.xlane.xlu0 %262 }
  0xc9   : > { %v271_v29 = vmax.f32 %v255_v25, %v263_v28 }
  0xca   : > { %277 = vst.msk [vmem:[#allocation3 + $0x18] sm:$0xff] %vm212_vm0, %v273_v27 }
  0xcb   : > { %275 = vst.msk [vmem:[#allocation3 + $0x8] sm:$0xff] %vm212_vm0, %v271_v29  ;;  %v238_v33 = vpop.xlane.xlu1 %237 }
  0xcc   : > { %v246_v34 = vadd.f32 %v238_v33, %v230_v30  ;;  %v235_v35 = vpop.xlane.xlu0 %234 }
  0xcd   : > { %v245_v36 = vadd.f32 %v235_v35, %v229_v32  ;;  %v291_v39 = vld [vmem:[#allocation3 + $0x10] sm:$0xff] }
  0xce   : > { %251 = vst.msk [vmem:[#allocation2 + $0x8] sm:$0xff] %vm212_vm0, %v246_v34  ;;  %v289_v46 = vld [vmem:[#allocation3] sm:$0xff] }
  0xcf   : > { %250 = vst.msk [vmem:[#allocation2] sm:$0xff] %vm212_vm0, %v245_v36  ;;  %v244_v40 = vpop.xlane.xlu1 %243 }
  0xd0   : > { %v248_v41 = vadd.f32 %v244_v40, %v232_v37  ;;  %v241_v42 = vpop.xlane.xlu0 %240 }
  0xd1   : > { %v292_v43 = vld [vmem:[#allocation3 + $0x18] sm:$0xff]  ;;  %v247_v44 = vadd.f32 %v241_v42, %v231_v38 }
  0xd2   : > { %v749_v45 = vpack.i.bf16 %v292_v43, %v291_v39  ;;  %v290_v47 = vld [vmem:[#allocation3 + $0x8] sm:$0xff]  ;;  %253 = vst.msk [vmem:[#allocation2 + $0x18] sm:$0xff] %vm212_vm0, %v248_v41 }
  0xd3   : > { %v744_v48 = vpack.i.bf16 %v290_v47, %v289_v46  ;;  %252 = vst.msk [vmem:[#allocation2 + $0x10] sm:$0xff] %vm212_vm0, %v247_v44 }
  0xd4   : > { %750 = vrot.lane.b32.xlu1 %v749_v45, %s859_s23 }
  0xd5   : > { %745 = vrot.lane.b32.xlu0 %v744_v48, %s859_s23  ;;  %v282_v50 = vld [vmem:[#allocation2 + $0x8] sm:$0xff] }
  0xd6   : > { %v281_v49 = vld [vmem:[#allocation2] sm:$0xff]  ;;  %v286_v55 = vmul.f32 0.00390625, %v282_v50 }
  0xd7   : > { %v285_v54 = vmul.f32 0.00390625, %v281_v49 }
  0xd9   : > { %v284_v52 = vld [vmem:[#allocation2 + $0x18] sm:$0xff] }
  0xda   : > { %v283_v51 = vld [vmem:[#allocation2 + $0x10] sm:$0xff]  ;;  %v288_v58 = vmul.f32 0.00390625, %v284_v52 }
  0xdb   : > { %v287_v57 = vmul.f32 0.00390625, %v283_v51 }
 0x146   : > { %v751_v53 = vpop.permute.xlu1 %750 }
 0x147   : > { %v746_v56 = vpop.permute.xlu0 %745  ;;  %v753_v59 = vunpack.i.h.bf16 %v751_v53  ;;  %v752_v60 = vunpack.i.l.bf16 %v751_v53 }
 0x148   : > { %v748_v61 = vunpack.i.h.bf16 %v746_v56  ;;  %v747_v62 = vunpack.i.l.bf16 %v746_v56 }
 0x149   : > { %v311_v2 = vsel %vm212_vm0, %v287_v57, %v752_v60  ;;  %v312_v3 = vsel %vm212_vm0, %v288_v58, %v753_v59 }
 0x14a   : > { %v309_v63 = vsel %vm212_vm0, %v285_v54, %v747_v62  ;;  %v310_v0 = vsel %vm212_vm0, %v286_v55, %v748_v61  ;;  %v679_v4 = vpack.c.bf16 %v312_v3, %v311_v2 }
 0x14b   : > { %v676_v1 = vpack.c.bf16 %v310_v0, %v309_v63 }
 0x14d   : > { %677 = vmatpush3.bf16.msra.mxu0 %v676_v1 }
 0x14e   : > { %678 = vmatprep.subr.bf16.mxu0 %v857_v31 }
 0x151   : > { %680 = vmatpush3.bf16.msra.mxu0 %v679_v4 }
 0x154   : > { %665 = vmatmul.mubr.msk.f32.vlgmr.msra.gmra.mrb[0].mxu0 %vm318_vm2, %v313_v5 }
 0x227   : > { %v388_v7 = vpop.f32.mrb[0].mxu0 }
 0x228   : > { %v392_v8 = vmax.f32 %v388_v7, 0.0  ;;  %v666_v9 = vpop.f32.mrb[1].mxu0 }
 0x22a   : > { %667 = vmatprep.subr.msk.mxu1 %vm406_vm4, %v392_v8 }
 0x22b   : > { %668 = vmatpush3.msk.msra.mxu1 %vm406_vm4, %v392_v8 }
 0x22c   : > { %670 = vmatmul.mubr.msk.f32.vlgmr.msra.gmra.mrb[0].mxu1 %vm393_vm3, %v315_v10 }
 0x22d   : > { %672 = vmatprep.mubr.msk.f32.mxu1 %vm393_vm3, %v316_v11 }
 0x230   : > { %673 = vmatmul.mubr.msk.f32.gmra.mrb[2].mxu1 %vm393_vm3, %v317_v12 }
 0x2ff   : > { %v671_v13 = vpop.f32.mrb[0].mxu1 }
 0x300   : > { %501 = vrot.lane.b32.xlu1 %v671_v13, %s860_s21  ;;  %v476_v14 = vpop.f32.mrb[1].mxu1 }
 0x303   : > { %v674_v15 = vpop.f32.mrb[2].mxu1 }
 0x304   : > { %499 = vrot.lane.b32.xlu1 %v476_v14, %s860_s21  ;;  %v486_v16 = vpop.f32.mrb[3].mxu1 }
 0x305   : > { %503 = vrot.lane.b32.xlu0 %v486_v16, %s860_s21 }
 0x308   : > { %505 = vrot.lane.b32.xlu1 %v674_v15, %s860_s21 }
 0x372   : > { %v502_v17 = vpop.permute.xlu1 %501 }
 0x373   : > { %v512_v18 = vadd.f32 %v671_v13, %v502_v17 }
 0x375   : > { %v639_v19 = vmul.f32 -1.442695, %v512_v18 }
 0x376   : > { %v500_v20 = vpop.permute.xlu1 %499 }
 0x377   : > { %754 = vpow2.f32 %v639_v19  ;;  %v511_v21 = vadd.f32 %v500_v20, %v476_v14  ;;  %v504_v22 = vpop.permute.xlu0 %503 }
 0x378   : > { %v513_v23 = vadd.f32 %v504_v22, %v486_v16 }
 0x379   : > { %v638_v24 = vmul.f32 -1.442695, %v511_v21 }
 0x37a   : > { %v640_v25 = vmul.f32 -1.442695, %v513_v23  ;;  %v506_v26 = vpop.permute.xlu1 %505 }
 0x37b   : > { %756 = vpow2.f32 %v638_v24  ;;  %v514_v27 = vadd.f32 %v674_v15, %v506_v26 }
 0x37c   : > { %758 = vpow2.f32 %v640_v25 }
 0x37d   : > { %v641_v28 = vmul.f32 -1.442695, %v514_v27 }
 0x37f   : > { %760 = vpow2.f32 %v641_v28 }
 0x381   : > { %v755_v29 = vpop.eup %754 }
 0x382   : > { %v528_v30 = vadd.f32 1.0, %v755_v29 }
 0x384   : > { %762 = vrcp.f32 %v528_v30 }
 0x385   : > { %v757_v31 = vpop.eup %756 }
 0x386   : > { %v759_v32 = vpop.eup %758  ;;  %v527_v33 = vadd.f32 1.0, %v757_v31 }
 0x387   : > { %v529_v34 = vadd.f32 1.0, %v759_v32 }
 0x388   : > { %764 = vrcp.f32 %v527_v33 }
 0x389   : > { %v761_v35 = vpop.eup %760  ;;  %766 = vrcp.f32 %v529_v34 }
 0x38a   : > { %v530_v36 = vadd.f32 1.0, %v761_v35 }
 0x38c   : > { %768 = vrcp.f32 %v530_v36 }
 0x38e   : > { %v763_v37 = vpop.eup %762 }
 0x38f   : > { %540 = vst.msk [vmem:[%s207_s27 + $0x8] sm:$0xff] %vm212_vm0, %v763_v37 }
 0x392   : > { %v765_v38 = vpop.eup %764 }
 0x393   : > { %v767_v39 = vpop.eup %766  ;;  %539 = vst.msk [vmem:[%s207_s27] sm:$0xff] %vm212_vm0, %v765_v38 }
 0x394   : > { %541 = vst.msk [vmem:[%s207_s27 + $0x10] sm:$0xff] %vm212_vm0, %v767_v39 }
 0x396   : > { %v769_v40 = vpop.eup %768 }
 0x397   : > { %542 = vst.msk [vmem:[%s207_s27 + $0x18] sm:$0xff] %vm212_vm0, %v769_v40 }
 0x398 PF: > { %s16_s17 = sadd.s32 1, %s850_s17   ;;  %s1051_s12 = smov %s834_s13 }
 0x399   : > { %p13_p9 = scmp.ge.s32.totalorder %s16_s17, 4   ;;  %s1052_s13 = smov %s838_s14 }
 0x39a   : > { %s1053_s14 = smov %s930_s24  ;;  %s1054_s15 = smov %s846_s16 }
 0x39b   : > { %s1055_s16 = smov %s1057_s19  ;;  %15 = sbr.rel (!%p13_p9) target bundleno = 4 (0x4), region = 80 }
 0x3a2   :  { %564 = vsyncpa [#allocation5], 1 }
 0x3a3   :  { %566 = vsyncpa [#allocation5 + $0x1], 1 }

</bundles_post_ra>
